<compile_context>
chip_gen: v7x
topology: tpu7x:2x2x1
jax: 0.10.0
libtpu: 0.0.40
codegen_flags: <defaults>
</compile_context>

<pallas_src>
from typing import NamedTuple

import jax
import jax.numpy as jnp
from jax.experimental import pallas as pl
from jax.experimental.pallas import tpu as pltpu

_LANE = 128
_SUBLANE_BF16 = 16                       # bf16 packs 16 sublanes per vreg
_TB_MAX = 256                            # max batch rows per grid step
_W1_RESIDENT_BYTES = 8 * 1024 * 1024     # keep w1 fully VMEM-resident below this
_KT = 512                                # K (D) tile when streaming w1 (mult. of 128)


def _round_up(x, m):
    return ((x + m - 1) // m) * m


def _tile_config(D, inner, C):
    """Static tiling decisions from the head dimensions."""
    inner_pad = _round_up(max(inner, _LANE), _LANE)
    C_pad = _round_up(max(C, _LANE), _LANE)
    if D * inner_pad * 2 <= _W1_RESIDENT_BYTES:
        tk, D_pad = D, D                        # single K step, w1 stays resident
    else:
        tk, D_pad = _KT, _round_up(D, _KT)      # stream w1 through K tiles
    return D_pad, tk, inner_pad, C_pad


def _batch_tiles(B):
    n_b = pl.cdiv(B, _TB_MAX)
    tile_b = _round_up(pl.cdiv(B, n_b), _SUBLANE_BF16)
    return n_b * tile_b, tile_b


class HeadParams(NamedTuple):
    w1: jax.Array          # [D_pad, inner_pad] bf16
    b1: jax.Array          # [1, inner_pad]     f32
    w2: jax.Array          # [inner_pad, C_pad] bf16
    b2: jax.Array          # [1, C_pad]         f32
    input_dim: int
    inner_dim: int
    num_classes: int


def prepare_head_params(w1, b1, w2, b2):
    """One-time weight prep (call at init, NOT per forward): bf16 cast + zero-pad
    to lane / reduction-aligned shapes.  Padded rows/cols are zero, so they do not
    change the math."""
    D, inner = w1.shape
    C = w2.shape[1]
    D_pad, _, inner_pad, C_pad = _tile_config(D, inner, C)
    w1_p = jnp.pad(w1.astype(jnp.bfloat16),
                   ((0, D_pad - D), (0, inner_pad - inner)))
    b1_p = jnp.pad(jnp.reshape(b1, (1, inner)).astype(jnp.float32),
                   ((0, 0), (0, inner_pad - inner)))
    w2_p = jnp.pad(w2.astype(jnp.bfloat16),
                   ((0, inner_pad - inner), (0, C_pad - C)))
    b2_p = jnp.pad(jnp.reshape(b2, (1, C)).astype(jnp.float32),
                   ((0, 0), (0, C_pad - C)))
    return HeadParams(w1_p, b1_p, w2_p, b2_p, D, inner, C)


def _cls_head_kernel(x_ref, w1_ref, b1_ref, w2_ref, b2_ref, out_ref, acc_ref):
    # x_ref:   [TB, tk]           bf16   (CLS tokens, K-tile of D)
    # w1_ref:  [tk, inner_pad]    bf16   b1_ref: [1, inner_pad] f32
    # w2_ref:  [inner_pad, Cpad]  bf16   b2_ref: [1, Cpad]      f32
    # out_ref: [TB, Cpad] f32     acc_ref: [TB, inner_pad] f32 scratch (dense acc)
    k = pl.program_id(1)

    @pl.when(k == 0)
    def _():
        acc_ref[...] = jnp.zeros_like(acc_ref)

    acc_ref[...] += jnp.dot(x_ref[...], w1_ref[...],
                            preferred_element_type=jnp.float32)

    @pl.when(k == pl.num_programs(1) - 1)
    def _():
        h = jnp.tanh(acc_ref[...] + b1_ref[...])                  # dense bias + tanh, f32
        y = jnp.dot(h.astype(jnp.bfloat16), w2_ref[...],
                    preferred_element_type=jnp.float32)           # out_proj, f32 acc
        out_ref[...] = y + b2_ref[...]


def _build_pallas_call(n_b, tile_b, n_k, tk, inner_pad, C_pad, single_buffer_consts):
    const_kw = dict(pipeline_mode=pl.Buffered(1)) if single_buffer_consts else {}
    w1_kw = const_kw if n_k == 1 else {}   # w1 is only grid-constant when not K-tiled

    B_pad = n_b * tile_b
    w_bufs = 1 if single_buffer_consts else 2
    w1_bufs = w_bufs if n_k == 1 else 2
    vmem_bytes = (
        2 * tile_b * tk * 2                 # x   (bf16, double-buffered)
        + w1_bufs * tk * inner_pad * 2      # w1  (bf16)
        + w_bufs * inner_pad * 4            # b1  (f32)
        + w_bufs * inner_pad * C_pad * 2    # w2  (bf16)
        + w_bufs * C_pad * 4                # b2  (f32)
        + 2 * tile_b * C_pad * 4            # out (f32, double-buffered)
        + tile_b * inner_pad * 4            # acc scratch
    )
    vmem_limit = min(max(int(vmem_bytes * 1.5) + (4 << 20), 32 << 20), 64 << 20)

    cost = pl.CostEstimate(
        flops=2 * B_pad * (n_k * tk) * inner_pad + 2 * B_pad * inner_pad * C_pad,
        transcendentals=B_pad * inner_pad,
        bytes_accessed=(B_pad * n_k * tk * 2 + n_k * tk * inner_pad * 2
                        + inner_pad * 4 + inner_pad * C_pad * 2 + C_pad * 4
                        + B_pad * C_pad * 4),
    )

    return pl.pallas_call(
        _cls_head_kernel,
        out_shape=jax.ShapeDtypeStruct((B_pad, C_pad), jnp.float32),
        grid_spec=pltpu.PrefetchScalarGridSpec(
            num_scalar_prefetch=0,
            grid=(n_b, n_k),
            in_specs=[
                # Batch/K-tiled CLS features.
                pl.BlockSpec((tile_b, tk), lambda i, k: (i, k)),
                # Weights / biases: constant index maps -> VMEM-resident across grid.
                pl.BlockSpec((tk, inner_pad), lambda i, k: (k, 0), **w1_kw),
                pl.BlockSpec((1, inner_pad), lambda i, k: (0, 0), **const_kw),
                pl.BlockSpec((inner_pad, C_pad), lambda i, k: (0, 0), **const_kw),
                pl.BlockSpec((1, C_pad), lambda i, k: (0, 0), **const_kw),
            ],
            out_specs=pl.BlockSpec((tile_b, C_pad), lambda i, k: (i, 0)),
            scratch_shapes=[pltpu.VMEM((tile_b, inner_pad), jnp.float32)],
        ),
        compiler_params=pltpu.CompilerParams(
            dimension_semantics=("parallel", "arbitrary"),
            vmem_limit_bytes=vmem_limit),
        cost_estimate=cost,
    )


def classification_head(features, params: HeadParams):
    """features: [B, T, D] (any float dtype).  Returns logits [B, C] f32."""
    B, _, D = features.shape
    assert D == params.input_dim, (D, params.input_dim)
    inner, C = params.inner_dim, params.num_classes
    D_pad, tk, inner_pad, C_pad = _tile_config(D, inner, C)
    B_pad, tile_b = _batch_tiles(B)
    n_b, n_k = B_pad // tile_b, D_pad // tk

    # CLS slice + batch/reduction padding.  This touches activations only; weights
    # were prepared once in prepare_head_params (no per-call weight convert/pad).
    x_cls = features[:, 0, :].astype(jnp.bfloat16)
    x_cls = jnp.pad(x_cls, ((0, B_pad - B), (0, D_pad - D)))

    def run(single_buffer_consts):
        call = _build_pallas_call(n_b, tile_b, n_k, tk, inner_pad, C_pad,
                                  single_buffer_consts)
        return call(x_cls, params.w1, params.b1, params.w2, params.b2)

    try:
        out_padded = run(True)       # single-buffer the grid-constant weight blocks
    except Exception:
        # pl.Buffered(1) rejected by this jax/Mosaic version -> default buffering.
        out_padded = run(False)

    return out_padded[:B, :C]


def reference_head(features, w1, b1, w2, b2):
    x = features[:, 0, :]
    h = jnp.tanh(x @ w1 + jnp.reshape(b1, (1, -1)))
    return h @ w2 + jnp.reshape(b2, (1, -1))


if __name__ == "__main__":
    key = jax.random.PRNGKey(0)

    # (B, T, D, inner, C): small shapes consistent with the module's forward.  The
    # second config exercises non-multiple-of-128 inner, odd num_classes and padded
    # batch rows (the C_pad/B_pad slicing paths flagged in review).
    configs = [(2, 8, 32, 32, 8), (20, 8, 64, 48, 3)]
    for B, T, D, inner, C in configs:
        key, k_feat, k_w1, k_b1, k_w2, k_b2 = jax.random.split(key, 6)
        features = jax.random.normal(k_feat, (B, T, D), dtype=jnp.float32)
        # nn.Linear weights stored transposed ([in, out]); deterministic synthetic init.
        w1 = jax.random.normal(k_w1, (D, inner), dtype=jnp.float32) * 0.05
        b1 = jax.random.normal(k_b1, (inner,), dtype=jnp.float32) * 0.05
        w2 = jax.random.normal(k_w2, (inner, C), dtype=jnp.float32) * 0.05
        b2 = jax.random.normal(k_b2, (C,), dtype=jnp.float32) * 0.05

        params = prepare_head_params(w1, b1, w2, b2)       # one-time, at init
        out = jax.block_until_ready(classification_head(features, params))

        ref = reference_head(features, w1, b1, w2, b2)
        assert out.shape == (B, C), f"bad shape {out.shape}"
        # bf16 matmul operands with f32 accumulation vs a pure-f32 reference.
        err = jnp.max(jnp.abs(out - ref))
        assert jnp.allclose(out, ref, atol=2e-2, rtol=2e-2), \
            f"mismatch vs reference (max abs err {err})"

    print("KERNEL_OK")
</pallas_src>

<mosaic_0001>
module attributes {stable_mosaic.version = 11 : i64} {
  func.func @_cls_head_kernel(%arg0: i32, %arg1: i32, %arg2: memref<16x32xbf16, #tpu.memory_space<vmem>>, %arg3: memref<32x128xbf16, #tpu.memory_space<vmem>>, %arg4: memref<1x128xf32, #tpu.memory_space<vmem>>, %arg5: memref<128x128xbf16, #tpu.memory_space<vmem>>, %arg6: memref<1x128xf32, #tpu.memory_space<vmem>>, %arg7: memref<16x128xf32, #tpu.memory_space<vmem>>, %arg8: memref<16x128xf32, #tpu.memory_space<vmem>>) attributes {dimension_semantics = [#tpu.dimension_semantics<parallel>, #tpu.dimension_semantics<arbitrary>], iteration_bounds = array<i64: 1, 1>, scalar_prefetch = 0 : i64, scratch_operands = 1 : i64, tpu.core_type = #tpu.core_type<tc>, window_params = [{transform_indices = @transform_0, window_bounds = array<i64: 16, 32>}, {pipeline_mode = #tpu.pipeline_mode<synchronous>, transform_indices = @transform_1, window_bounds = array<i64: 32, 128>}, {pipeline_mode = #tpu.pipeline_mode<synchronous>, transform_indices = @transform_2, window_bounds = array<i64: 1, 128>}, {pipeline_mode = #tpu.pipeline_mode<synchronous>, transform_indices = @transform_3, window_bounds = array<i64: 128, 128>}, {pipeline_mode = #tpu.pipeline_mode<synchronous>, transform_indices = @transform_4, window_bounds = array<i64: 1, 128>}, {transform_indices = @transform_5, window_bounds = array<i64: 16, 128>}]} {
    %c0_i32 = arith.constant 0 : i32
    %0 = arith.cmpi eq, %arg1, %c0_i32 : i32
    %1 = arith.extui %0 : i1 to i32
    %c0_i32_0 = arith.constant 0 : i32
    %2 = arith.cmpi ne, %1, %c0_i32_0 : i32
    scf.if %2 {
      %cst_10 = arith.constant 0.000000e+00 : f32
      %12 = vector.broadcast %cst_10 : f32 to vector<16x128xf32>
      %c0_11 = arith.constant 0 : index
      %c0_12 = arith.constant 0 : index
      %13 = vector.load %arg8[%c0_11, %c0_12] : memref<16x128xf32, #tpu.memory_space<vmem>>, vector<16x128xf32>
      tpu.vector_store %arg8[%c0_11, %c0_12], %12 {strides = array<i32>} : memref<16x128xf32, #tpu.memory_space<vmem>>, vector<16x128xf32>,
    } else {
    }
    %c0 = arith.constant 0 : index
    %c0_1 = arith.constant 0 : index
    %3 = vector.load %arg8[%c0, %c0_1] : memref<16x128xf32, #tpu.memory_space<vmem>>, vector<16x128xf32>
    %c0_2 = arith.constant 0 : index
    %c0_3 = arith.constant 0 : index
    %4 = vector.load %arg2[%c0_2, %c0_3] : memref<16x32xbf16, #tpu.memory_space<vmem>>, vector<16x32xbf16>
    %c0_4 = arith.constant 0 : index
    %c0_5 = arith.constant 0 : index
    %5 = vector.load %arg3[%c0_4, %c0_5] : memref<32x128xbf16, #tpu.memory_space<vmem>>, vector<32x128xbf16>
    %cst = arith.constant dense<0.000000e+00> : vector<16x128xf32>
    %6 = tpu.matmul %4, %5, %cst {dimension_numbers = #tpu.dot_dimension_numbers<[1], [0], [0], [1], [0, 0, 1, 1], [], []>} : vector<16x32xbf16>, vector<32x128xbf16>, vector<16x128xf32> -> vector<16x128xf32>
    %7 = arith.addf %3, %6 : vector<16x128xf32>
    %c0_6 = arith.constant 0 : index
    %c0_7 = arith.constant 0 : index
    %8 = vector.load %arg8[%c0_6, %c0_7] : memref<16x128xf32, #tpu.memory_space<vmem>>, vector<16x128xf32>
    tpu.vector_store %arg8[%c0_6, %c0_7], %7 {strides = array<i32>} : memref<16x128xf32, #tpu.memory_space<vmem>>, vector<16x128xf32>,
    %c0_i32_8 = arith.constant 0 : i32
    %9 = arith.cmpi eq, %arg1, %c0_i32_8 : i32
    %10 = arith.extui %9 : i1 to i32
    %c0_i32_9 = arith.constant 0 : i32
    %11 = arith.cmpi ne, %10, %c0_i32_9 : i32
    scf.if %11 {
      %c0_10 = arith.constant 0 : index
      %c0_11 = arith.constant 0 : index
      %12 = vector.load %arg8[%c0_10, %c0_11] : memref<16x128xf32, #tpu.memory_space<vmem>>, vector<16x128xf32>
      %c0_12 = arith.constant 0 : index
      %c0_13 = arith.constant 0 : index
      %13 = vector.load %arg4[%c0_12, %c0_13] : memref<1x128xf32, #tpu.memory_space<vmem>>, vector<1x128xf32>
      %14 = vector.broadcast %13 : vector<1x128xf32> to vector<16x128xf32>
      %15 = arith.addf %12, %14 : vector<16x128xf32>
      %16 = math.tanh %15 : vector<16x128xf32>
      %17 = arith.truncf %16 : vector<16x128xf32> to vector<16x128xbf16>
      %c0_14 = arith.constant 0 : index
      %c0_15 = arith.constant 0 : index
      %18 = vector.load %arg5[%c0_14, %c0_15] : memref<128x128xbf16, #tpu.memory_space<vmem>>, vector<128x128xbf16>
      %cst_16 = arith.constant dense<0.000000e+00> : vector<16x128xf32>
      %19 = tpu.matmul %17, %18, %cst_16 {dimension_numbers = #tpu.dot_dimension_numbers<[1], [0], [0], [1], [0, 0, 1, 1], [], []>} : vector<16x128xbf16>, vector<128x128xbf16>, vector<16x128xf32> -> vector<16x128xf32>
      %c0_17 = arith.constant 0 : index
      %c0_18 = arith.constant 0 : index
      %20 = vector.load %arg6[%c0_17, %c0_18] : memref<1x128xf32, #tpu.memory_space<vmem>>, vector<1x128xf32>
      %21 = vector.broadcast %20 : vector<1x128xf32> to vector<16x128xf32>
      %22 = arith.addf %19, %21 : vector<16x128xf32>
      %c0_19 = arith.constant 0 : index
      %c0_20 = arith.constant 0 : index
      %23 = vector.load %arg7[%c0_19, %c0_20] : memref<16x128xf32, #tpu.memory_space<vmem>>, vector<16x128xf32>
      tpu.vector_store %arg7[%c0_19, %c0_20], %22 {strides = array<i32>} : memref<16x128xf32, #tpu.memory_space<vmem>>, vector<16x128xf32>,
    } else {
    }
    return
  }
  func.func @transform_0(%arg0: i32, %arg1: i32) -> (i32, i32) {
    %c0_i32 = arith.constant 0 : i32
    return %arg0, %arg1 : i32, i32
  }
  func.func @transform_1(%arg0: i32, %arg1: i32) -> (i32, i32) {
    %c0_i32 = arith.constant 0 : i32
    %c0_i32_0 = arith.constant 0 : i32
    return %arg1, %c0_i32 : i32, i32
  }
  func.func @transform_2(%arg0: i32, %arg1: i32) -> (i32, i32) {
    %c0_i32 = arith.constant 0 : i32
    %c0_i32_0 = arith.constant 0 : i32
    %c0_i32_1 = arith.constant 0 : i32
    return %c0_i32, %c0_i32_0 : i32, i32
  }
  func.func @transform_3(%arg0: i32, %arg1: i32) -> (i32, i32) {
    %c0_i32 = arith.constant 0 : i32
    %c0_i32_0 = arith.constant 0 : i32
    %c0_i32_1 = arith.constant 0 : i32
    return %c0_i32, %c0_i32_0 : i32, i32
  }
  func.func @transform_4(%arg0: i32, %arg1: i32) -> (i32, i32) {
    %c0_i32 = arith.constant 0 : i32
    %c0_i32_0 = arith.constant 0 : i32
    %c0_i32_1 = arith.constant 0 : i32
    return %c0_i32, %c0_i32_0 : i32, i32
  }
  func.func @transform_5(%arg0: i32, %arg1: i32) -> (i32, i32) {
    %c0_i32 = arith.constant 0 : i32
    %c0_i32_0 = arith.constant 0 : i32
    return %arg0, %c0_i32 : i32, i32
  }
}

module attributes {stable_mosaic.version = 11 : i64} {
  func.func @_cls_head_kernel(%arg0: i32, %arg1: i32, %arg2: memref<16x32xbf16, #tpu.memory_space<vmem>>, %arg3: memref<32x128xbf16, #tpu.memory_space<vmem>>, %arg4: memref<1x128xf32, #tpu.memory_space<vmem>>, %arg5: memref<128x128xbf16, #tpu.memory_space<vmem>>, %arg6: memref<1x128xf32, #tpu.memory_space<vmem>>, %arg7: memref<16x128xf32, #tpu.memory_space<vmem>>, %arg8: memref<16x128xf32, #tpu.memory_space<vmem>>) attributes {dimension_semantics = [#tpu.dimension_semantics<parallel>, #tpu.dimension_semantics<arbitrary>], iteration_bounds = array<i64: 1, 1>, scalar_prefetch = 0 : i64, scratch_operands = 1 : i64, tpu.core_type = #tpu.core_type<tc>, window_params = [{transform_indices = @transform_0, window_bounds = array<i64: 16, 32>}, {transform_indices = @transform_1, window_bounds = array<i64: 32, 128>}, {pipeline_mode = #tpu.pipeline_mode<synchronous>, transform_indices = @transform_2, window_bounds = array<i64: 1, 128>}, {pipeline_mode = #tpu.pipeline_mode<synchronous>, transform_indices = @transform_3, window_bounds = array<i64: 128, 128>}, {pipeline_mode = #tpu.pipeline_mode<synchronous>, transform_indices = @transform_4, window_bounds = array<i64: 1, 128>}, {transform_indices = @transform_5, window_bounds = array<i64: 16, 128>}]} {
    %c0_i32 = arith.constant 0 : i32
    %0 = arith.cmpi eq, %arg1, %c0_i32 : i32
    %1 = arith.extui %0 : i1 to i32
    %c0_i32_0 = arith.constant 0 : i32
    %2 = arith.cmpi ne, %1, %c0_i32_0 : i32
    scf.if %2 {
      %cst_10 = arith.constant 0.000000e+00 : f32
      %12 = vector.broadcast %cst_10 : f32 to vector<16x128xf32>
      %c0_11 = arith.constant 0 : index
      %c0_12 = arith.constant 0 : index
      %13 = vector.load %arg8[%c0_11, %c0_12] : memref<16x128xf32, #tpu.memory_space<vmem>>, vector<16x128xf32>
      tpu.vector_store %arg8[%c0_11, %c0_12], %12 {strides = array<i32>} : memref<16x128xf32, #tpu.memory_space<vmem>>, vector<16x128xf32>,
    } else {
    }
    %c0 = arith.constant 0 : index
    %c0_1 = arith.constant 0 : index
    %3 = vector.load %arg8[%c0, %c0_1] : memref<16x128xf32, #tpu.memory_space<vmem>>, vector<16x128xf32>
    %c0_2 = arith.constant 0 : index
    %c0_3 = arith.constant 0 : index
    %4 = vector.load %arg2[%c0_2, %c0_3] : memref<16x32xbf16, #tpu.memory_space<vmem>>, vector<16x32xbf16>
    %c0_4 = arith.constant 0 : index
    %c0_5 = arith.constant 0 : index
    %5 = vector.load %arg3[%c0_4, %c0_5] : memref<32x128xbf16, #tpu.memory_space<vmem>>, vector<32x128xbf16>
    %cst = arith.constant dense<0.000000e+00> : vector<16x128xf32>
    %6 = tpu.matmul %4, %5, %cst {dimension_numbers = #tpu.dot_dimension_numbers<[1], [0], [0], [1], [0, 0, 1, 1], [], []>} : vector<16x32xbf16>, vector<32x128xbf16>, vector<16x128xf32> -> vector<16x128xf32>
    %7 = arith.addf %3, %6 : vector<16x128xf32>
    %c0_6 = arith.constant 0 : index
    %c0_7 = arith.constant 0 : index
    %8 = vector.load %arg8[%c0_6, %c0_7] : memref<16x128xf32, #tpu.memory_space<vmem>>, vector<16x128xf32>
    tpu.vector_store %arg8[%c0_6, %c0_7], %7 {strides = array<i32>} : memref<16x128xf32, #tpu.memory_space<vmem>>, vector<16x128xf32>,
    %c0_i32_8 = arith.constant 0 : i32
    %9 = arith.cmpi eq, %arg1, %c0_i32_8 : i32
    %10 = arith.extui %9 : i1 to i32
    %c0_i32_9 = arith.constant 0 : i32
    %11 = arith.cmpi ne, %10, %c0_i32_9 : i32
    scf.if %11 {
      %c0_10 = arith.constant 0 : index
      %c0_11 = arith.constant 0 : index
      %12 = vector.load %arg8[%c0_10, %c0_11] : memref<16x128xf32, #tpu.memory_space<vmem>>, vector<16x128xf32>
      %c0_12 = arith.constant 0 : index
      %c0_13 = arith.constant 0 : index
      %13 = vector.load %arg4[%c0_12, %c0_13] : memref<1x128xf32, #tpu.memory_space<vmem>>, vector<1x128xf32>
      %14 = vector.broadcast %13 : vector<1x128xf32> to vector<16x128xf32>
      %15 = arith.addf %12, %14 : vector<16x128xf32>
      %16 = math.tanh %15 : vector<16x128xf32>
      %17 = arith.truncf %16 : vector<16x128xf32> to vector<16x128xbf16>
      %c0_14 = arith.constant 0 : index
      %c0_15 = arith.constant 0 : index
      %18 = vector.load %arg5[%c0_14, %c0_15] : memref<128x128xbf16, #tpu.memory_space<vmem>>, vector<128x128xbf16>
      %cst_16 = arith.constant dense<0.000000e+00> : vector<16x128xf32>
      %19 = tpu.matmul %17, %18, %cst_16 {dimension_numbers = #tpu.dot_dimension_numbers<[1], [0], [0], [1], [0, 0, 1, 1], [], []>} : vector<16x128xbf16>, vector<128x128xbf16>, vector<16x128xf32> -> vector<16x128xf32>
      %c0_17 = arith.constant 0 : index
      %c0_18 = arith.constant 0 : index
      %20 = vector.load %arg6[%c0_17, %c0_18] : memref<1x128xf32, #tpu.memory_space<vmem>>, vector<1x128xf32>
      %21 = vector.broadcast %20 : vector<1x128xf32> to vector<16x128xf32>
      %22 = arith.addf %19, %21 : vector<16x128xf32>
      %c0_19 = arith.constant 0 : index
      %c0_20 = arith.constant 0 : index
      %23 = vector.load %arg7[%c0_19, %c0_20] : memref<16x128xf32, #tpu.memory_space<vmem>>, vector<16x128xf32>
      tpu.vector_store %arg7[%c0_19, %c0_20], %22 {strides = array<i32>} : memref<16x128xf32, #tpu.memory_space<vmem>>, vector<16x128xf32>,
    } else {
    }
    return
  }
  func.func @transform_0(%arg0: i32, %arg1: i32) -> (i32, i32) {
    %c0_i32 = arith.constant 0 : i32
    return %arg0, %arg1 : i32, i32
  }
  func.func @transform_1(%arg0: i32, %arg1: i32) -> (i32, i32) {
    %c0_i32 = arith.constant 0 : i32
    %c0_i32_0 = arith.constant 0 : i32
    return %arg1, %c0_i32 : i32, i32
  }
  func.func @transform_2(%arg0: i32, %arg1: i32) -> (i32, i32) {
    %c0_i32 = arith.constant 0 : i32
    %c0_i32_0 = arith.constant 0 : i32
    %c0_i32_1 = arith.constant 0 : i32
    return %c0_i32, %c0_i32_0 : i32, i32
  }
  func.func @transform_3(%arg0: i32, %arg1: i32) -> (i32, i32) {
    %c0_i32 = arith.constant 0 : i32
    %c0_i32_0 = arith.constant 0 : i32
    %c0_i32_1 = arith.constant 0 : i32
    return %c0_i32, %c0_i32_0 : i32, i32
  }
  func.func @transform_4(%arg0: i32, %arg1: i32) -> (i32, i32) {
    %c0_i32 = arith.constant 0 : i32
    %c0_i32_0 = arith.constant 0 : i32
    %c0_i32_1 = arith.constant 0 : i32
    return %c0_i32, %c0_i32_0 : i32, i32
  }
  func.func @transform_5(%arg0: i32, %arg1: i32) -> (i32, i32) {
    %c0_i32 = arith.constant 0 : i32
    %c0_i32_0 = arith.constant 0 : i32
    return %arg0, %c0_i32 : i32, i32
  }
}

</mosaic_0001>

<bundles_post_ra>
// kernel: tpu_custom_call.1
= control target key start
LH: loop header
LB: loop body
LE: loop exit
PB: predicated region body
PF: predicated region fallthrough
CT: control target
= control target key end

     0   :  { %10 = vsyncpa [#allocation4], 0  ;;  %s575_s0 = inlined_call_operand.hbm [shape: bf16[16,32], index: 0, kind: input, shape index: {}]   ;;  %s576_s1 = inlined_call_operand.hbm [shape: bf16[32,128], index: 1, kind: input, shape index: {}]   ;;  %s577_s2 = inlined_call_operand.vmem [shape: f32[1,128], index: 2, kind: input, shape index: {}]   ;;  %s578_s3 = inlined_call_operand.hbm [shape: bf16[128,128], index: 3, kind: input, shape index: {}]   ;;  %s579_s4 = inlined_call_operand.vmem [shape: f32[1,128], index: 4, kind: input, shape index: {}]   ;;  %s580_s5 = inlined_call_operand.hbm [shape: f32[16,128], index: 5, kind: output, shape index: {}]  }
   0x1   :  { %11 = vsyncpa [#allocation7], 0 }
   0x2   :  { %12 = vsyncpa [#allocation5], 0  ;;  %s465_s18 = smov [#allocation6]   ;;  %s466_s20 = smov [#allocation3]  }
   0x3   :  { %s30_s19 = sshll.u32 %s465_s18, 4  ;;  %s18_s21 = sshll.u32 %s466_s20, 4  ;;  %s31_s19 = int_to_ptr.vmem [resolvable:$true] %s30_s19  ;;  %s505_s21 = int_to_ptr.vmem [resolvable:$true] %s18_s21 }
   0x4   :  { %s371_s24 = scalar_lea.hbm %s576_s1, 256 }
   0x5   :  { %p372_p0 = scmp.ne.s32.totalorder %s576_s1, %s371_s24  ;;  %p375_p1 = scmp.lt.u32.totalorder %s371_s24, %s576_s1 }
   0x7   :  { %p377_p2 = pnand %p375_p1, %p372_p0 }
   0x9   :  { %380 = shalt.err (!%p377_p2)
}
   0xa   :  { %s381_s29 = scalar_lea.vmem %s31_s19, 256  ;;  %p386_p4 = scmp.lt.s32.totalorder %s31_s19, %s31_s19 }
   0xb   :  { %p382_p3 = scmp.ne.s32.totalorder %s31_s19, %s381_s29  ;;  %p387_p5 = scmp.lt.s32.totalorder %s381_s29, %s381_s29 }
   0xd   :  { %p388_p6 = por %p387_p5, %p386_p4 }
   0xf   :  { %p389_p7 = pnand %p388_p6, %p382_p3 }
  0x11   :  { %392 = shalt.err (!%p389_p7)
}
  0x12   :  { %s467_s30 = smov 64   ;;  %s468_s6 = smov 4  }
  0x13   :  { %36 = dma.hbm_to_vmem [thread:$0]  %s576_s1, 256, %s31_s19, [#allocation7], %s467_s30, %s467_s30, %s468_s6  }
  0x14   :  { %s393_s11 = scalar_lea.hbm %s575_s0, 128 }
  0x15   :  { %p394_p8 = scmp.ne.s32.totalorder %s575_s0, %s393_s11  ;;  %p397_p9 = scmp.lt.u32.totalorder %s393_s11, %s575_s0 }
  0x17   :  { %p399_p10 = pnand %p397_p9, %p394_p8 }
  0x19   :  { %402 = shalt.err (!%p399_p10)
}
  0x1a   :  { %s403_s16 = scalar_lea.vmem %s505_s21, 128  ;;  %p408_p12 = scmp.lt.s32.totalorder %s505_s21, %s505_s21 }
  0x1b   :  { %p404_p11 = scmp.ne.s32.totalorder %s505_s21, %s403_s16  ;;  %p409_p13 = scmp.lt.s32.totalorder %s403_s16, %s403_s16 }
  0x1d   :  { %p410_p0 = por %p409_p13, %p408_p12 }
  0x1f   :  { %p411_p1 = pnand %p410_p0, %p404_p11 }
  0x21   :  { %414 = shalt.err (!%p411_p1)
}
  0x22   :  { %24 = dma.hbm_to_vmem [thread:$0]  %s575_s0, 128, %s505_s21, [#allocation4], %s467_s30, %s467_s30, %s468_s6  }
  0x23   :  { %s469_s18 = smov [#allocation8]   ;;  %s415_s23 = scalar_lea.hbm %s578_s3, 1024 }
  0x24   :  { %s44_s19 = sshll.u32 %s469_s18, 4  ;;  %p416_p2 = scmp.ne.s32.totalorder %s578_s3, %s415_s23  ;;  %s45_s19 = int_to_ptr.vmem [resolvable:$true] %s44_s19 }
  0x25   :  { %p419_p3 = scmp.lt.u32.totalorder %s415_s23, %s578_s3 }
  0x27   :  { %p421_p4 = pnand %p419_p3, %p416_p2 }
  0x29   :  { %424 = shalt.err (!%p421_p4)
}
  0x2a   :  { %s425_s28 = scalar_lea.vmem %s45_s19, 1024  ;;  %p430_p6 = scmp.lt.s32.totalorder %s45_s19, %s45_s19 }
  0x2b   :  { %p426_p5 = scmp.ne.s32.totalorder %s45_s19, %s425_s28  ;;  %p431_p7 = scmp.lt.s32.totalorder %s425_s28, %s425_s28 }
  0x2d   :  { %p432_p8 = por %p431_p7, %p430_p6 }
  0x2f   :  { %p433_p9 = pnand %p432_p8, %p426_p5 }
  0x31   :  { %436 = shalt.err (!%p433_p9)
}
  0x32   :  { %50 = dma.hbm_to_vmem [thread:$0]  %s578_s3, 1024, %s45_s19, [#allocation7], %s467_s30, %s467_s30, %s468_s6  }
  0x33   :  { %459 = dma.done.wait [#allocation4], 128  }
  0x34   :  { %460 = vsyncadd [#allocation4], 4294967168 }
  0x35   :  { %461 = dma.done.wait [#allocation7], 1280  }
  0x36   :  { %462 = vsyncadd [#allocation7], 4294966016  ;;  %v470_v0 = vmov 0.0   ;;  %vm471_vm0 = vmmov 0   ;;  %v356_v1 = vld [vmem:[#allocation6] sm:$0xff]   ;;  %v357_v2 = vld [vmem:[#allocation6 + $0x8] sm:$0xff]  }
  0x37   :  { %318 = vmatprep.subr.bf16.mxu0 %v470_v0  ;;  %322 = vmatprep.mubr.msk.bf16.mxu0 %vm471_vm0, %v470_v0  ;;  %v359_v3 = vld [vmem:[#allocation8] sm:$0xff]   ;;  %v358_v4 = vld [vmem:[#allocation3] sm:$0xff]   ;;  %vm94_vm1 = vcmask 261120   ;;  %v361_v6 = vld [vmem:[#allocation8 + $0x10] sm:$0xff]   ;;  %s472_s7 = smov [#allocation9]  }
  0x38   :  { %326 = vmatprep.subr.bf16.mxu1 %v470_v0  ;;  %342 = vmatprep.mubr.msk.bf16.mxu1 %vm471_vm0, %v470_v0  ;;  %v360_v5 = vld [vmem:[#allocation8 + $0x8] sm:$0xff]   ;;  %v362_v7 = vld [vmem:[#allocation8 + $0x18] sm:$0xff]   ;;  %v363_v8 = vld [vmem:[#allocation8 + $0x20] sm:$0xff]   ;;  %s279_s8 = sshll.u32 %s472_s7, 4  ;;  %s280_s8 = int_to_ptr.vmem [resolvable:$true] %s279_s8 }
  0x39   :  { %319 = vmatpush3.bf16.msra.mxu0 %v356_v1  ;;  %327 = vmatpush3.bf16.msra.mxu1 %v359_v3  ;;  %v364_v9 = vld [vmem:[#allocation8 + $0x28] sm:$0xff]   ;;  %v365_v10 = vld [vmem:[#allocation8 + $0x30] sm:$0xff]   ;;  %v366_v11 = vld [vmem:[#allocation8 + $0x38] sm:$0xff]   ;;  %p442_p11 = scmp.lt.s32.totalorder %s280_s8, %s280_s8 }
  0x3a   :  { %320 = vmatprep.subr.bf16.mxu0 %v470_v0  ;;  %328 = vmatprep.subr.bf16.mxu1 %v470_v0  ;;  %v296_v12 = vld [vmem:[%s577_s2] ss:$0 sm:$0xff]  ;;  %s437_s2 = scalar_lea.vmem %s280_s8, 256 }
  0x3b   :  { %v297_v22 = vld [vmem:[%s579_s4] ss:$0 sm:$0xff]  ;;  %p438_p10 = scmp.ne.s32.totalorder %s280_s8, %s437_s2  ;;  %p443_p12 = scmp.lt.s32.totalorder %s437_s2, %s437_s2 }
  0x3d   :  { %321 = vmatpush3.bf16.msra.mxu0 %v357_v2  ;;  %329 = vmatpush3.bf16.msra.mxu1 %v360_v5  ;;  %p444_p13 = por %p443_p12, %p442_p11 }
  0x3e   :  { %330 = vmatprep.subr.bf16.mxu1 %v470_v0 }
  0x3f   :  { %p445_p0 = pnand %p444_p13, %p438_p10 }
  0x40   :  { %323 = vmatmul.mubr.msk.bf16.vlgmr.msra.gmra.mrb[0].mxu0 %vm94_vm1, %v358_v4 }
  0x41   :  { %331 = vmatpush3.bf16.msra.mxu1 %v361_v6 }
  0x42   :  { %332 = vmatprep.subr.bf16.mxu1 %v470_v0 }
  0x45   :  { %333 = vmatpush3.bf16.msra.mxu1 %v362_v7 }
  0x46   :  { %334 = vmatprep.subr.bf16.mxu1 %v470_v0 }
  0x49   :  { %335 = vmatpush3.bf16.msra.mxu1 %v363_v8 }
  0x4a   :  { %336 = vmatprep.subr.bf16.mxu1 %v470_v0 }
  0x4d   :  { %337 = vmatpush3.bf16.msra.mxu1 %v364_v9 }
  0x4e   :  { %338 = vmatprep.subr.bf16.mxu1 %v470_v0 }
  0x51   :  { %339 = vmatpush3.bf16.msra.mxu1 %v365_v10 }
  0x52   :  { %340 = vmatprep.subr.bf16.mxu1 %v470_v0 }
  0x55   :  { %341 = vmatpush3.bf16.msra.mxu1 %v366_v11 }
 0x113   :  { %v132_v13 = vpop.f32.mrb[0].mxu0 }
 0x114   :  { %v155_v14 = vadd.f32 %v296_v12, %v132_v13  ;;  %v324_v15 = vpop.f32.mrb[1].mxu0 }
 0x115   :  { %v135_v16 = vpop.f32.mrb[2].mxu0 }
 0x116   :  { %v156_v17 = vadd.f32 %v296_v12, %v135_v16  ;;  %v325_v18 = vpop.f32.mrb[3].mxu0  ;;  %367 = vtanh.f32 %v155_v14 }
 0x118   :  { %369 = vtanh.f32 %v156_v17 }
 0x120   :  { %v368_v19 = vpop.eup %367 }
 0x122   :  { %v370_v20 = vpop.eup %369 }
 0x123   :  { %v159_v21 = vpack.c.bf16 %v370_v20, %v368_v19 }
 0x125   :  { %343 = vmatmul.mubr.bf16.vlgmr.msra.gmra.mrb[0].mxu1 %v159_v21 }
 0x1f8   :  { %v265_v23 = vpop.f32.mrb[0].mxu1 }
 0x1f9   :  { %v266_v24 = vadd.f32 %v297_v22, %v265_v23  ;;  %v344_v25 = vpop.f32.mrb[1].mxu1 }
 0x1fa   :  { %v268_v26 = vpop.f32.mrb[2].mxu1 }
 0x1fb   :  { %272 = vst [vmem:[#allocation9] sm:$0xff] %v266_v24  ;;  %v269_v27 = vadd.f32 %v297_v22, %v268_v26  ;;  %v345_v28 = vpop.f32.mrb[3].mxu1 }
 0x1fd   :  { %273 = vst [vmem:[#allocation9 + $0x8] sm:$0xff] %v269_v27 }
 0x1fe   :  { %448 = shalt.err (!%p445_p0)
}
 0x1ff   :  { %s449_s10 = scalar_lea.hbm %s580_s5, 256 }
 0x200   :  { %p450_p1 = scmp.ne.s32.totalorder %s580_s5, %s449_s10  ;;  %p453_p2 = scmp.lt.u32.totalorder %s449_s10, %s580_s5 }
 0x202   :  { %p455_p3 = pnand %p453_p2, %p450_p1 }
 0x204   :  { %458 = shalt.err (!%p455_p3)
}
 0x205   :  { %s473_s15 = smov 128   ;;  %s474_s16 = smov 8  }
 0x206   :  { %285 = dma.vmem_to_hbm [thread:$0]  %s280_s8, 256, %s580_s5, [#allocation5], %s473_s15, %s473_s15, %s474_s16  }
 0x207   :  { %463 = dma.done.wait [#allocation5], 256  }
 0x208   :  { %464 = vsyncadd [#allocation5], 4294967040 }
 0x209   :  { %289 = vsyncpa [#allocation4], 1 }
 0x20a   :  { %290 = vsyncpa [#allocation7], 1 }
 0x20b   :  { %291 = vsyncpa [#allocation5], 1 }

// kernel: tpu_custom_call.1
= control target key start
LH: loop header
LB: loop body
LE: loop exit
PB: predicated region body
PF: predicated region fallthrough
CT: control target
= control target key end

     0   :  { %10 = vsyncpa [#allocation4], 0  ;;  %s575_s0 = inlined_call_operand.hbm [shape: bf16[16,32], index: 0, kind: input, shape index: {}]   ;;  %s576_s1 = inlined_call_operand.hbm [shape: bf16[32,128], index: 1, kind: input, shape index: {}]   ;;  %s577_s2 = inlined_call_operand.vmem [shape: f32[1,128], index: 2, kind: input, shape index: {}]   ;;  %s578_s3 = inlined_call_operand.hbm [shape: bf16[128,128], index: 3, kind: input, shape index: {}]   ;;  %s579_s4 = inlined_call_operand.vmem [shape: f32[1,128], index: 4, kind: input, shape index: {}]   ;;  %s580_s5 = inlined_call_operand.hbm [shape: f32[16,128], index: 5, kind: output, shape index: {}]  }
   0x1   :  { %11 = vsyncpa [#allocation7], 0 }
   0x2   :  { %12 = vsyncpa [#allocation5], 0  ;;  %s465_s18 = smov [#allocation6]   ;;  %s466_s20 = smov [#allocation3]  }
   0x3   :  { %s30_s19 = sshll.u32 %s465_s18, 4  ;;  %s18_s21 = sshll.u32 %s466_s20, 4  ;;  %s31_s19 = int_to_ptr.vmem [resolvable:$true] %s30_s19  ;;  %s505_s21 = int_to_ptr.vmem [resolvable:$true] %s18_s21 }
   0x4   :  { %s371_s24 = scalar_lea.hbm %s576_s1, 256 }
   0x5   :  { %p372_p0 = scmp.ne.s32.totalorder %s576_s1, %s371_s24  ;;  %p375_p1 = scmp.lt.u32.totalorder %s371_s24, %s576_s1 }
   0x7   :  { %p377_p2 = pnand %p375_p1, %p372_p0 }
   0x9   :  { %380 = shalt.err (!%p377_p2)
}
   0xa   :  { %s381_s29 = scalar_lea.vmem %s31_s19, 256  ;;  %p386_p4 = scmp.lt.s32.totalorder %s31_s19, %s31_s19 }
   0xb   :  { %p382_p3 = scmp.ne.s32.totalorder %s31_s19, %s381_s29  ;;  %p387_p5 = scmp.lt.s32.totalorder %s381_s29, %s381_s29 }
   0xd   :  { %p388_p6 = por %p387_p5, %p386_p4 }
   0xf   :  { %p389_p7 = pnand %p388_p6, %p382_p3 }
  0x11   :  { %392 = shalt.err (!%p389_p7)
}
  0x12   :  { %s467_s30 = smov 64   ;;  %s468_s6 = smov 4  }
  0x13   :  { %36 = dma.hbm_to_vmem [thread:$0]  %s576_s1, 256, %s31_s19, [#allocation7], %s467_s30, %s467_s30, %s468_s6  }
  0x14   :  { %s393_s11 = scalar_lea.hbm %s575_s0, 128 }
  0x15   :  { %p394_p8 = scmp.ne.s32.totalorder %s575_s0, %s393_s11  ;;  %p397_p9 = scmp.lt.u32.totalorder %s393_s11, %s575_s0 }
  0x17   :  { %p399_p10 = pnand %p397_p9, %p394_p8 }
  0x19   :  { %402 = shalt.err (!%p399_p10)
}
  0x1a   :  { %s403_s16 = scalar_lea.vmem %s505_s21, 128  ;;  %p408_p12 = scmp.lt.s32.totalorder %s505_s21, %s505_s21 }
  0x1b   :  { %p404_p11 = scmp.ne.s32.totalorder %s505_s21, %s403_s16  ;;  %p409_p13 = scmp.lt.s32.totalorder %s403_s16, %s403_s16 }
  0x1d   :  { %p410_p0 = por %p409_p13, %p408_p12 }
  0x1f   :  { %p411_p1 = pnand %p410_p0, %p404_p11 }
  0x21   :  { %414 = shalt.err (!%p411_p1)
}
  0x22   :  { %24 = dma.hbm_to_vmem [thread:$0]  %s575_s0, 128, %s505_s21, [#allocation4], %s467_s30, %s467_s30, %s468_s6  }
  0x23   :  { %s469_s18 = smov [#allocation8]   ;;  %s415_s23 = scalar_lea.hbm %s578_s3, 1024 }
  0x24   :  { %s44_s19 = sshll.u32 %s469_s18, 4  ;;  %p416_p2 = scmp.ne.s32.totalorder %s578_s3, %s415_s23  ;;  %s45_s19 = int_to_ptr.vmem [resolvable:$true] %s44_s19 }
  0x25   :  { %p419_p3 = scmp.lt.u32.totalorder %s415_s23, %s578_s3 }
  0x27   :  { %p421_p4 = pnand %p419_p3, %p416_p2 }
  0x29   :  { %424 = shalt.err (!%p421_p4)
}
  0x2a   :  { %s425_s28 = scalar_lea.vmem %s45_s19, 1024  ;;  %p430_p6 = scmp.lt.s32.totalorder %s45_s19, %s45_s19 }
  0x2b   :  { %p426_p5 = scmp.ne.s32.totalorder %s45_s19, %s425_s28  ;;  %p431_p7 = scmp.lt.s32.totalorder %s425_s28, %s425_s28 }
  0x2d   :  { %p432_p8 = por %p431_p7, %p430_p6 }
  0x2f   :  { %p433_p9 = pnand %p432_p8, %p426_p5 }
  0x31   :  { %436 = shalt.err (!%p433_p9)
}
  0x32   :  { %50 = dma.hbm_to_vmem [thread:$0]  %s578_s3, 1024, %s45_s19, [#allocation7], %s467_s30, %s467_s30, %s468_s6  }
  0x33   :  { %459 = dma.done.wait [#allocation4], 128  }
  0x34   :  { %460 = vsyncadd [#allocation4], 4294967168 }
  0x35   :  { %461 = dma.done.wait [#allocation7], 1280  }
  0x36   :  { %462 = vsyncadd [#allocation7], 4294966016  ;;  %v470_v0 = vmov 0.0   ;;  %vm471_vm0 = vmmov 0   ;;  %v356_v1 = vld [vmem:[#allocation6] sm:$0xff]   ;;  %v357_v2 = vld [vmem:[#allocation6 + $0x8] sm:$0xff]  }
  0x37   :  { %318 = vmatprep.subr.bf16.mxu0 %v470_v0  ;;  %322 = vmatprep.mubr.msk.bf16.mxu0 %vm471_vm0, %v470_v0  ;;  %v359_v3 = vld [vmem:[#allocation8] sm:$0xff]   ;;  %v358_v4 = vld [vmem:[#allocation3] sm:$0xff]   ;;  %vm94_vm1 = vcmask 261120   ;;  %v361_v6 = vld [vmem:[#allocation8 + $0x10] sm:$0xff]   ;;  %s472_s7 = smov [#allocation9]  }
  0x38   :  { %326 = vmatprep.subr.bf16.mxu1 %v470_v0  ;;  %342 = vmatprep.mubr.msk.bf16.mxu1 %vm471_vm0, %v470_v0  ;;  %v360_v5 = vld [vmem:[#allocation8 + $0x8] sm:$0xff]   ;;  %v362_v7 = vld [vmem:[#allocation8 + $0x18] sm:$0xff]   ;;  %v363_v8 = vld [vmem:[#allocation8 + $0x20] sm:$0xff]   ;;  %s279_s8 = sshll.u32 %s472_s7, 4  ;;  %s280_s8 = int_to_ptr.vmem [resolvable:$true] %s279_s8 }
  0x39   :  { %319 = vmatpush3.bf16.msra.mxu0 %v356_v1  ;;  %327 = vmatpush3.bf16.msra.mxu1 %v359_v3  ;;  %v364_v9 = vld [vmem:[#allocation8 + $0x28] sm:$0xff]   ;;  %v365_v10 = vld [vmem:[#allocation8 + $0x30] sm:$0xff]   ;;  %v366_v11 = vld [vmem:[#allocation8 + $0x38] sm:$0xff]   ;;  %p442_p11 = scmp.lt.s32.totalorder %s280_s8, %s280_s8 }
  0x3a   :  { %320 = vmatprep.subr.bf16.mxu0 %v470_v0  ;;  %328 = vmatprep.subr.bf16.mxu1 %v470_v0  ;;  %v296_v12 = vld [vmem:[%s577_s2] ss:$0 sm:$0xff]  ;;  %s437_s2 = scalar_lea.vmem %s280_s8, 256 }
  0x3b   :  { %v297_v22 = vld [vmem:[%s579_s4] ss:$0 sm:$0xff]  ;;  %p438_p10 = scmp.ne.s32.totalorder %s280_s8, %s437_s2  ;;  %p443_p12 = scmp.lt.s32.totalorder %s437_s2, %s437_s2 }
  0x3d   :  { %321 = vmatpush3.bf16.msra.mxu0 %v357_v2  ;;  %329 = vmatpush3.bf16.msra.mxu1 %v360_v5  ;;  %p444_p13 = por %p443_p12, %p442_p11 }
  0x3e   :  { %330 = vmatprep.subr.bf16.mxu1 %v470_v0 }
  0x3f   :  { %p445_p0 = pnand %p444_p13, %p438_p10 }
  0x40   :  { %323 = vmatmul.mubr.msk.bf16.vlgmr.msra.gmra.mrb[0].mxu0 %vm94_vm1, %v358_v4 }
  0x41   :  { %331 = vmatpush3.bf16.msra.mxu1 %v361_v6 }
  0x42   :  { %332 = vmatprep.subr.bf16.mxu1 %v470_v0 }
  0x45   :  { %333 = vmatpush3.bf16.msra.mxu1 %v362_v7 }
  0x46   :  { %334 = vmatprep.subr.bf16.mxu1 %v470_v0 }
  0x49   :  { %335 = vmatpush3.bf16.msra.mxu1 %v363_v8 }
  0x4a   :  { %336 = vmatprep.subr.bf16.mxu1 %v470_v0 }
  0x4d   :  { %337 = vmatpush3.bf16.msra.mxu1 %v364_v9 }
  0x4e   :  { %338 = vmatprep.subr.bf16.mxu1 %v470_v0 }
  0x51   :  { %339 = vmatpush3.bf16.msra.mxu1 %v365_v10 }
  0x52   :  { %340 = vmatprep.subr.bf16.mxu1 %v470_v0 }
  0x55   :  { %341 = vmatpush3.bf16.msra.mxu1 %v366_v11 }
 0x113   :  { %v132_v13 = vpop.f32.mrb[0].mxu0 }
 0x114   :  { %v155_v14 = vadd.f32 %v296_v12, %v132_v13  ;;  %v324_v15 = vpop.f32.mrb[1].mxu0 }
 0x115   :  { %v135_v16 = vpop.f32.mrb[2].mxu0 }
 0x116   :  { %v156_v17 = vadd.f32 %v296_v12, %v135_v16  ;;  %v325_v18 = vpop.f32.mrb[3].mxu0  ;;  %367 = vtanh.f32 %v155_v14 }
 0x118   :  { %369 = vtanh.f32 %v156_v17 }
 0x120   :  { %v368_v19 = vpop.eup %367 }
 0x122   :  { %v370_v20 = vpop.eup %369 }
 0x123   :  { %v159_v21 = vpack.c.bf16 %v370_v20, %v368_v19 }
 0x125   :  { %343 = vmatmul.mubr.bf16.vlgmr.msra.gmra.mrb[0].mxu1 %v159_v21 }
 0x1f8   :  { %v265_v23 = vpop.f32.mrb[0].mxu1 }
 0x1f9   :  { %v266_v24 = vadd.f32 %v297_v22, %v265_v23  ;;  %v344_v25 = vpop.f32.mrb[1].mxu1 }
 0x1fa   :  { %v268_v26 = vpop.f32.mrb[2].mxu1 }
 0x1fb   :  { %272 = vst [vmem:[#allocation9] sm:$0xff] %v266_v24  ;;  %v269_v27 = vadd.f32 %v297_v22, %v268_v26  ;;  %v345_v28 = vpop.f32.mrb[3].mxu1 }
 0x1fd   :  { %273 = vst [vmem:[#allocation9 + $0x8] sm:$0xff] %v269_v27 }
 0x1fe   :  { %448 = shalt.err (!%p445_p0)
}
 0x1ff   :  { %s449_s10 = scalar_lea.hbm %s580_s5, 256 }
 0x200   :  { %p450_p1 = scmp.ne.s32.totalorder %s580_s5, %s449_s10  ;;  %p453_p2 = scmp.lt.u32.totalorder %s449_s10, %s580_s5 }
 0x202   :  { %p455_p3 = pnand %p453_p2, %p450_p1 }
 0x204   :  { %458 = shalt.err (!%p455_p3)
}
 0x205   :  { %s473_s15 = smov 128   ;;  %s474_s16 = smov 8  }
 0x206   :  { %285 = dma.vmem_to_hbm [thread:$0]  %s280_s8, 256, %s580_s5, [#allocation5], %s473_s15, %s473_s15, %s474_s16  }
 0x207   :  { %463 = dma.done.wait [#allocation5], 256  }
 0x208   :  { %464 = vsyncadd [#allocation5], 4294967040 }
 0x209   :  { %289 = vsyncpa [#allocation4], 1 }
 0x20a   :  { %290 = vsyncpa [#allocation7], 1 }
 0x20b   :  { %291 = vsyncpa [#allocation5], 1 }

</bundles_post_ra>
